<compile_context>
chip_gen: v7x
topology: tpu7x:2x2x1
jax: 0.10.0
libtpu: 0.0.40
codegen_flags: <defaults>
</compile_context>

<pallas_src>
import functools
import numpy as np
import jax
import jax.numpy as jnp
from jax import lax
from jax.experimental import pallas as pl
from jax.experimental.pallas import tpu as pltpu

_EPS = 1e-9


def _ge2e_kernel(dv_ref, ctrds_ref, wcn_ref, xsq_ref, ssq_ref, spk_ref, w_ref,
                 out_ref, *, n_uttr):
    """One row-tile of the GE2E 'softmax' loss.

    Layout: "speakers x rows" tensors are (N, r_tile) with the long row axis on
    the 128-lane axis; the softmax reduces over the small sublane axis N.  The
    only (N, r_tile) passes left are: speaker compare, the diagonal
    masked-select+reduce, two scaling multiplies, the excl/incl select, the
    exp shift (EUP) and the sum-exp reduce.
    """
    N = ctrds_ref.shape[0]            # number of speakers (softmax classes)
    M = n_uttr                        # utterances per speaker (static)
    inv_m1 = 1.0 / (M - 1)
    eps2 = _EPS * _EPS

    w = w_ref[0, 0]

    # S[k, r] = centroid_k . x_r  — MXU, f32 accumulation, rows on the lanes.
    S = lax.dot_general(ctrds_ref[...], dv_ref[...],
                        dimension_numbers=(((1,), (1,)), ((), ())),
                        preferred_element_type=jnp.float32)            # (N, r)

    xsq = xsq_ref[0]                                                   # (1, r)
    ssq = ssq_ref[0]                                                   # (1, r)
    spk = spk_ref[0]                                                   # (1, r)

    inv_xnorm = lax.rsqrt(jnp.maximum(xsq, eps2))                      # EUP

    # same[k, r] = (k == speaker(r)); padded rows carry speaker -1 -> all False.
    row_k = lax.broadcasted_iota(jnp.int32, (N, 1), 0)
    same = row_k == spk                                                # (N, r)

    # Diagonal pick S[spk(r), r] via a single masked sublane reduce.
    s_diag = jnp.sum(jnp.where(same, S, 0.0), axis=0, keepdims=True)   # (1, r)
    xs_dot = M * s_diag                       # x_r . (sum of its speaker's utts)

    # Exclusive centroid e = (sum - x) / (M - 1).
    num_excl = (xs_dot - xsq) * inv_m1                                 # x . e
    esq = jnp.maximum(ssq - 2.0 * xs_dot + xsq, 0.0) * (inv_m1 * inv_m1)
    inv_enorm = lax.rsqrt(jnp.maximum(esq, eps2))                      # (1, r)

    # Scaled logits z = w * cos.  The bias b cancels exactly in
    # -log_softmax(z + b)[target], so it is never materialized.
    z_excl = (w * num_excl) * (inv_xnorm * inv_enorm)                  # (1, r)
    z_incl = (S * inv_xnorm) * wcn_ref[...]        # wcn = w / ||centroid||  (N, r)
    z = jnp.where(same, z_excl, z_incl)                                # (N, r)

    # log-sum-exp over the N classes with the static shift |w| (|cos| <= 1).
    m = jnp.abs(w)
    se = jnp.sum(jnp.exp(z - m), axis=0, keepdims=True)                # (1, r)
    loss_cols = (m + jnp.log(se)) - z_excl                             # (1, r)

    valid = (spk >= 0).astype(jnp.float32)                             # pad mask
    out_ref[0] = jnp.sum(loss_cols * valid, axis=1, keepdims=True)     # (1, 1)


def _row_tile(n_rows, n_spkr, d_pad, itemsize, budget_bytes=20 << 20):
    """Row-tile size: the biggest lane-dense tile whose double-buffered input
    block plus ~10 live (N, r) f32 intermediates stays inside a conservative
    VMEM budget (fits v7x's 64 MiB as well as v5e/v6e).  Forces >= 2 grid steps
    so the 'parallel' axis can occupy both TensorCores on v7x."""
    per_row = 2 * d_pad * itemsize + 10 * n_spkr * 4 + 32
    cap = max(int(budget_bytes // per_row), 8)
    if cap >= n_rows:
        if n_rows <= 8:
            return n_rows
        half = (n_rows + 1) // 2
        return ((half + 7) // 8) * 8
    if cap >= 256:
        return (cap // 128) * 128
    return max((cap // 8) * 8, 8)


def ge2e_loss(dvecs, w=10.0, b=-5.0):
    """GE2E 'softmax' loss for dvecs of shape (N, M, D). Returns a scalar."""
    # TODO(synk): loss_method='contrast' branch not implemented (module default
    # is 'softmax', which is what this kernel reproduces).
    N, M, D = dvecs.shape
    assert M >= 2, "GE2E needs at least two utterances per speaker"
    dt = dvecs.dtype
    R = N * M
    eps2 = _EPS * _EPS

    # Zero-pad the embedding dim to a multiple of 128 (exact for dots / norms).
    Dp = -(-D // 128) * 128
    dvf = dvecs.reshape(R, D)
    if Dp != D:
        dvf = jnp.pad(dvf, ((0, 0), (0, Dp - D)))

    # Tiny per-speaker / per-row precompute (fused by XLA into one pass).
    dv32 = dvf.astype(jnp.float32)
    ctrds32 = jnp.mean(dv32.reshape(N, M, Dp), axis=1)                 # (N, Dp)
    cnorm2 = jnp.sum(ctrds32 * ctrds32, axis=1, keepdims=True)         # (N, 1)
    xsq = jnp.sum(dv32 * dv32, axis=1)                                 # (R,)

    w32 = jnp.asarray(w, jnp.float32)
    wcn = w32 * lax.rsqrt(jnp.maximum(cnorm2, eps2))                   # (N, 1)
    ctrds_mm = ctrds32.astype(dt)                                      # MXU operand

    spk = jnp.repeat(jnp.arange(N, dtype=jnp.int32), M)                # (R,)
    ssq = (M * M) * jnp.repeat(cnorm2[:, 0], M)                        # (R,) f32

    r_tile = _row_tile(R, N, Dp, dvecs.dtype.itemsize)
    num_tiles = -(-R // r_tile)
    r_pad = num_tiles * r_tile - R
    if r_pad:
        dvf = jnp.pad(dvf, ((0, r_pad), (0, 0)))
        spk = jnp.pad(spk, (0, r_pad), constant_values=-1)
        ssq = jnp.pad(ssq, (0, r_pad))
        xsq = jnp.pad(xsq, (0, r_pad))

    xsq_tab = xsq.reshape(num_tiles, 1, r_tile)
    ssq_tab = ssq.reshape(num_tiles, 1, r_tile)
    spk_tab = spk.reshape(num_tiles, 1, r_tile)
    w_arr = jnp.full((1, 1), w32, dtype=jnp.float32)

    kernel = functools.partial(_ge2e_kernel, n_uttr=M)
    row_spec = pl.BlockSpec((1, 1, r_tile), lambda t: (t, 0, 0))

    parts = pl.pallas_call(
        kernel,
        out_shape=jax.ShapeDtypeStruct((num_tiles, 1, 1), jnp.float32),
        grid=(num_tiles,),
        in_specs=[
            pl.BlockSpec((r_tile, Dp), lambda t: (t, 0)),              # dvec rows
            pl.BlockSpec((N, Dp), lambda t: (0, 0)),                   # centroids (resident)
            pl.BlockSpec((N, 1), lambda t: (0, 0)),                    # w / ||centroid||
            row_spec,                                                  # ||x||^2 per row
            row_spec,                                                  # ||speaker sum||^2 per row
            row_spec,                                                  # speaker id per row (-1 = pad)
            pl.BlockSpec(memory_space=pltpu.MemorySpace.SMEM),         # w scalar
        ],
        out_specs=pl.BlockSpec((1, 1, 1), lambda t: (t, 0, 0)),        # per-tile partial loss
        compiler_params=pltpu.CompilerParams(
            dimension_semantics=("parallel",),
            vmem_limit_bytes=32 * 1024 * 1024),
    )(dvf, ctrds_mm, wcn, xsq_tab, ssq_tab, spk_tab, w_arr)
    return jnp.sum(parts)


def _ge2e_ref_numpy(dvecs, w=10.0, b=-5.0, eps=1e-9):
    """Pure-numpy reference mirroring the PyTorch module."""
    x = np.asarray(dvecs, dtype=np.float64)
    N, M, D = x.shape
    ctrds = x.mean(axis=1)                                             # (N, D)
    cos = np.zeros((N, M, N), dtype=np.float64)
    for j in range(N):
        for i in range(M):
            v = x[j, i]
            for k in range(N):
                if k == j:
                    c = (x[j].sum(axis=0) - v) / (M - 1)
                else:
                    c = ctrds[k]
                cos[j, i, k] = float(v @ c) / max(np.linalg.norm(v) * np.linalg.norm(c), eps)
    logits = cos * w + b
    m = logits.max(axis=2, keepdims=True)
    logsm = (logits - m) - np.log(np.exp(logits - m).sum(axis=2, keepdims=True))
    loss = 0.0
    for j in range(N):
        for i in range(M):
            loss += -logsm[j, i, j]
    return loss


if __name__ == "__main__":
    N, M, D = 4, 8, 32   # speakers, utterances per speaker, embedding dim
    key = jax.random.PRNGKey(0)
    dvecs = jax.random.normal(key, (N, M, D), dtype=jnp.float32)

    init_w, init_b = 10.0, -5.0
    out = jax.jit(ge2e_loss)(dvecs, init_w, init_b)
    out = jax.block_until_ready(out)

    ref = _ge2e_ref_numpy(np.asarray(dvecs), init_w, init_b)
    assert np.allclose(float(out), ref, rtol=1e-3, atol=1e-3), (float(out), ref)

    print("KERNEL_OK")
</pallas_src>

<mosaic_0001>
module attributes {stable_mosaic.version = 11 : i64} {
  func.func @_ge2e_kernel(%arg0: i32, %arg1: memref<16x128xf32, #tpu.memory_space<vmem>>, %arg2: memref<4x128xf32, #tpu.memory_space<vmem>>, %arg3: memref<4x1xf32, #tpu.memory_space<vmem>>, %arg4: memref<1x1x16xf32, #tpu.memory_space<vmem>>, %arg5: memref<1x1x16xf32, #tpu.memory_space<vmem>>, %arg6: memref<1x1x16xi32, #tpu.memory_space<vmem>>, %arg7: memref<1x1xf32, #tpu.memory_space<smem>>, %arg8: memref<1x1x1xf32, #tpu.memory_space<vmem>>) attributes {dimension_semantics = [#tpu.dimension_semantics<parallel>], iteration_bounds = array<i64: 2>, scalar_prefetch = 0 : i64, scratch_operands = 0 : i64, tpu.core_type = #tpu.core_type<tc>, window_params = [{transform_indices = @transform_0, window_bounds = array<i64: 16, 128>}, {pipeline_mode = #tpu.pipeline_mode<synchronous>, transform_indices = @transform_1, window_bounds = array<i64: 4, 128>}, {pipeline_mode = #tpu.pipeline_mode<synchronous>, transform_indices = @transform_2, window_bounds = array<i64: 4, 1>}, {transform_indices = @transform_3, window_bounds = array<i64: 1, 1, 16>}, {transform_indices = @transform_4, window_bounds = array<i64: 1, 1, 16>}, {transform_indices = @transform_5, window_bounds = array<i64: 1, 1, 16>}, {transform_indices = @transform_6, window_bounds = array<i64: 1, 1>}, {transform_indices = @transform_7, window_bounds = array<i64: 1, 1, 1>}]} {
    %c0 = arith.constant 0 : index
    %c0_0 = arith.constant 0 : index
    %0 = memref.load %arg7[%c0, %c0_0] : memref<1x1xf32, #tpu.memory_space<smem>>
    %c0_1 = arith.constant 0 : index
    %c0_2 = arith.constant 0 : index
    %1 = vector.load %arg2[%c0_1, %c0_2] : memref<4x128xf32, #tpu.memory_space<vmem>>, vector<4x128xf32>
    %c0_3 = arith.constant 0 : index
    %c0_4 = arith.constant 0 : index
    %2 = vector.load %arg1[%c0_3, %c0_4] : memref<16x128xf32, #tpu.memory_space<vmem>>, vector<16x128xf32>
    %cst = arith.constant dense<0.000000e+00> : vector<4x16xf32>
    %3 = tpu.matmul %1, %2, %cst {dimension_numbers = #tpu.dot_dimension_numbers<[1], [1], [0], [0], [0, 0, 1, 0], [], []>} : vector<4x128xf32>, vector<16x128xf32>, vector<4x16xf32> -> vector<4x16xf32>
    %c0_5 = arith.constant 0 : index
    %c0_6 = arith.constant 0 : index
    %c0_7 = arith.constant 0 : index
    %4 = vector.load %arg4[%c0_5, %c0_6, %c0_7] : memref<1x1x16xf32, #tpu.memory_space<vmem>>, vector<1x1x16xf32>
    %5 = vector.shape_cast %4 : vector<1x1x16xf32> to vector<1x16xf32>
    %c0_8 = arith.constant 0 : index
    %c0_9 = arith.constant 0 : index
    %c0_10 = arith.constant 0 : index
    %6 = vector.load %arg5[%c0_8, %c0_9, %c0_10] : memref<1x1x16xf32, #tpu.memory_space<vmem>>, vector<1x1x16xf32>
    %7 = vector.shape_cast %6 : vector<1x1x16xf32> to vector<1x16xf32>
    %c0_11 = arith.constant 0 : index
    %c0_12 = arith.constant 0 : index
    %c0_13 = arith.constant 0 : index
    %8 = vector.load %arg6[%c0_11, %c0_12, %c0_13] : memref<1x1x16xi32, #tpu.memory_space<vmem>>, vector<1x1x16xi32>
    %9 = vector.shape_cast %8 : vector<1x1x16xi32> to vector<1x16xi32>
    %cst_14 = arith.constant 1.000000e-18 : f32
    %10 = vector.broadcast %cst_14 : f32 to vector<1x16xf32>
    %11 = arith.maximumf %5, %10 : vector<1x16xf32>
    %12 = math.rsqrt %11 : vector<1x16xf32>
    %13 = tpu.iota {dimensions = array<i32: 0>} : vector<4x1xi32>
    %14 = vector.broadcast %13 : vector<4x1xi32> to vector<4x16xi32>
    %15 = vector.broadcast %9 : vector<1x16xi32> to vector<4x16xi32>
    %16 = arith.cmpi eq, %14, %15 : vector<4x16xi32>
    %cst_15 = arith.constant 0.000000e+00 : f32
    %17 = vector.broadcast %cst_15 : f32 to vector<4x16xf32>
    %18 = arith.select %16, %3, %17 : vector<4x16xi1>, vector<4x16xf32>
    %cst_16 = arith.constant dense<0.000000e+00> : vector<16xf32>
    %19 = vector.multi_reduction <add>, %18, %cst_16 [0] : vector<4x16xf32> to vector<16xf32>
    %20 = vector.shape_cast %19 : vector<16xf32> to vector<1x16xf32>
    %cst_17 = arith.constant 8.000000e+00 : f32
    %21 = vector.broadcast %cst_17 : f32 to vector<1x16xf32>
    %22 = arith.mulf %21, %20 : vector<1x16xf32>
    %23 = arith.subf %22, %5 : vector<1x16xf32>
    %cst_18 = arith.constant 0.142857149 : f32
    %24 = vector.broadcast %cst_18 : f32 to vector<1x16xf32>
    %25 = arith.mulf %23, %24 : vector<1x16xf32>
    %cst_19 = arith.constant 2.000000e+00 : f32
    %26 = vector.broadcast %cst_19 : f32 to vector<1x16xf32>
    %27 = arith.mulf %26, %22 : vector<1x16xf32>
    %28 = arith.subf %7, %27 : vector<1x16xf32>
    %29 = arith.addf %28, %5 : vector<1x16xf32>
    %cst_20 = arith.constant 0.000000e+00 : f32
    %30 = vector.broadcast %cst_20 : f32 to vector<1x16xf32>
    %31 = arith.maximumf %29, %30 : vector<1x16xf32>
    %cst_21 = arith.constant 0.0204081628 : f32
    %32 = vector.broadcast %cst_21 : f32 to vector<1x16xf32>
    %33 = arith.mulf %31, %32 : vector<1x16xf32>
    %cst_22 = arith.constant 1.000000e-18 : f32
    %34 = vector.broadcast %cst_22 : f32 to vector<1x16xf32>
    %35 = arith.maximumf %33, %34 : vector<1x16xf32>
    %36 = math.rsqrt %35 : vector<1x16xf32>
    %37 = vector.broadcast %0 : f32 to vector<1x16xf32>
    %38 = arith.mulf %37, %25 : vector<1x16xf32>
    %39 = arith.mulf %12, %36 : vector<1x16xf32>
    %40 = arith.mulf %38, %39 : vector<1x16xf32>
    %41 = vector.broadcast %12 : vector<1x16xf32> to vector<4x16xf32>
    %42 = arith.mulf %3, %41 : vector<4x16xf32>
    %c0_23 = arith.constant 0 : index
    %c0_24 = arith.constant 0 : index
    %43 = vector.load %arg3[%c0_23, %c0_24] : memref<4x1xf32, #tpu.memory_space<vmem>>, vector<4x1xf32>
    %44 = vector.broadcast %43 : vector<4x1xf32> to vector<4x16xf32>
    %45 = arith.mulf %42, %44 : vector<4x16xf32>
    %46 = vector.shape_cast %40 : vector<1x16xf32> to vector<1x16xf32>
    %47 = vector.broadcast %46 : vector<1x16xf32> to vector<4x16xf32>
    %48 = arith.select %16, %47, %45 : vector<4x16xi1>, vector<4x16xf32>
    %49 = math.absf %0 : f32
    %50 = vector.broadcast %49 : f32 to vector<4x16xf32>
    %51 = arith.subf %48, %50 : vector<4x16xf32>
    %52 = math.exp %51 : vector<4x16xf32>
    %cst_25 = arith.constant dense<0.000000e+00> : vector<16xf32>
    %53 = vector.multi_reduction <add>, %52, %cst_25 [0] : vector<4x16xf32> to vector<16xf32>
    %54 = vector.shape_cast %53 : vector<16xf32> to vector<1x16xf32>
    %55 = math.log %54 : vector<1x16xf32>
    %56 = vector.broadcast %49 : f32 to vector<1x16xf32>
    %57 = arith.addf %56, %55 : vector<1x16xf32>
    %58 = arith.subf %57, %40 : vector<1x16xf32>
    %c0_i32 = arith.constant 0 : i32
    %59 = vector.broadcast %c0_i32 : i32 to vector<1x16xi32>
    %60 = arith.cmpi sge, %9, %59 : vector<1x16xi32>
    %61 = arith.extui %60 : vector<1x16xi1> to vector<1x16xi32>
    %62 = arith.sitofp %61 : vector<1x16xi32> to vector<1x16xf32>
    %63 = arith.mulf %58, %62 : vector<1x16xf32>
    %cst_26 = arith.constant dense<0.000000e+00> : vector<1xf32>
    %64 = vector.multi_reduction <add>, %63, %cst_26 [1] : vector<1x16xf32> to vector<1xf32>
    %65 = vector.shape_cast %64 : vector<1xf32> to vector<1x1xf32>
    %c0_27 = arith.constant 0 : index
    %c0_28 = arith.constant 0 : index
    %c0_29 = arith.constant 0 : index
    %66 = vector.load %arg8[%c0_27, %c0_28, %c0_29] : memref<1x1x1xf32, #tpu.memory_space<vmem>>, vector<1x1x1xf32>
    %67 = vector.shape_cast %66 : vector<1x1x1xf32> to vector<1x1xf32>
    %68 = vector.shape_cast %65 : vector<1x1xf32> to vector<1x1x1xf32>
    tpu.vector_store %arg8[%c0_27, %c0_28, %c0_29], %68 {strides = array<i32>} : memref<1x1x1xf32, #tpu.memory_space<vmem>>, vector<1x1x1xf32>,
    return
  }
  func.func @transform_0(%arg0: i32) -> (i32, i32) {
    %c0_i32 = arith.constant 0 : i32
    %c0_i32_0 = arith.constant 0 : i32
    return %arg0, %c0_i32 : i32, i32
  }
  func.func @transform_1(%arg0: i32) -> (i32, i32) {
    %c0_i32 = arith.constant 0 : i32
    %c0_i32_0 = arith.constant 0 : i32
    %c0_i32_1 = arith.constant 0 : i32
    return %c0_i32, %c0_i32_0 : i32, i32
  }
  func.func @transform_2(%arg0: i32) -> (i32, i32) {
    %c0_i32 = arith.constant 0 : i32
    %c0_i32_0 = arith.constant 0 : i32
    %c0_i32_1 = arith.constant 0 : i32
    return %c0_i32, %c0_i32_0 : i32, i32
  }
  func.func @transform_3(%arg0: i32) -> (i32, i32, i32) {
    %c0_i32 = arith.constant 0 : i32
    %c0_i32_0 = arith.constant 0 : i32
    %c0_i32_1 = arith.constant 0 : i32
    return %arg0, %c0_i32, %c0_i32_0 : i32, i32, i32
  }
  func.func @transform_4(%arg0: i32) -> (i32, i32, i32) {
    %c0_i32 = arith.constant 0 : i32
    %c0_i32_0 = arith.constant 0 : i32
    %c0_i32_1 = arith.constant 0 : i32
    return %arg0, %c0_i32, %c0_i32_0 : i32, i32, i32
  }
  func.func @transform_5(%arg0: i32) -> (i32, i32, i32) {
    %c0_i32 = arith.constant 0 : i32
    %c0_i32_0 = arith.constant 0 : i32
    %c0_i32_1 = arith.constant 0 : i32
    return %arg0, %c0_i32, %c0_i32_0 : i32, i32, i32
  }
  func.func @transform_6(%arg0: i32) -> (i32, i32) {
    %c0_i32 = arith.constant 0 : i32
    %c0_i32_0 = arith.constant 0 : i32
    %c0_i32_1 = arith.constant 0 : i32
    return %c0_i32, %c0_i32_0 : i32, i32
  }
  func.func @transform_7(%arg0: i32) -> (i32, i32, i32) {
    %c0_i32 = arith.constant 0 : i32
    %c0_i32_0 = arith.constant 0 : i32
    %c0_i32_1 = arith.constant 0 : i32
    return %arg0, %c0_i32, %c0_i32_0 : i32, i32, i32
  }
}

</mosaic_0001>

<bundles_post_ra>
// kernel: ge2e_loss.1
= control target key start
LH: loop header
LB: loop body
LE: loop exit
PB: predicated region body
PF: predicated region fallthrough
CT: control target
= control target key end

     0   :  { %s647_s26 = smov 0   ;;  %s698_s0 = inlined_call_operand.vmem [shape: f32[32,128], index: 0, kind: input, shape index: {}]   ;;  %s699_s1 = inlined_call_operand.vmem [shape: f32[4,128], index: 1, kind: input, shape index: {}]   ;;  %s700_s2 = inlined_call_operand.vmem [shape: f32[4,1], index: 2, kind: input, shape index: {}]   ;;  %s701_s3 = inlined_call_operand.vmem [shape: f32[2,1,16], index: 3, kind: input, shape index: {}]   ;;  %s702_s4 = inlined_call_operand.vmem [shape: f32[2,1,16], index: 4, kind: input, shape index: {}]   ;;  %s703_s5 = inlined_call_operand.vmem [shape: s32[2,1,16], index: 5, kind: input, shape index: {}]   ;;  %s704_s6 = inlined_call_operand.<no memory space> [shape: f32[1,1], index: 6, kind: input, shape index: {}]   ;;  %s705_s7 = inlined_call_operand.vmem [shape: f32[2,1,1], index: 7, kind: output, shape index: {}]  }
   0x1   :  { %12 = sst [smem:[#allocation2]] %s704_s6 }
   0x2 LB: > { %s548_s27 = sadd.s32 4294967295, %s598_s26   ;;  %p552_p0 = scmp.ge.s32.totalorder %s598_s26, 1  ;;  %s598_s26 = sphi %s647_s26, %s18_s26  }
   0x3   : > { %p263_p1 = scmp.lt.s32.totalorder %s598_s26, 3 }
   0x5   : > { %p264_p2 = pnand %p552_p0, %p263_p1 }
   0x6   : > { %s553_s28 = sshll.u32 (!%p264_p2), %s548_s27, 1  ;;  %p308_p3 = scmp.lt.s32.totalorder (!%p264_p2), %s548_s27, 1  ;;  %v600_v0 = vmov (!%p264_p2), 0.0|0.0   ;;  %vm601_vm0 = vmmov (!%p264_p2), 0   ;;  %v602_v1 = vmov (!%p264_p2), 0.0   ;;  %v603_v3 = vmov (!%p264_p2), 0  }
   0x7   : > { %267 = sbr.rel (%p264_p2) target bundleno = 476 (0x1dc), region = 48  ;;  %568 = vmatprep.subr.bf16.mxu0 (!%p264_p2), %v600_v0  ;;  %p303_p4 = scmp.lt.s32.totalorder (!%p264_p2), %s553_s28, 3  ;;  %565 = vmatprep.mubr.msk.f32.mxu0 (!%p264_p2), %vm601_vm0, %v602_v1  ;;  %v436_v2 = vld [vmem:[%s700_s2] sm:$0xf] (!%p264_p2)  ;;  %v399_v10 = vlaneseq (!%p264_p2)  ;;  %vm407_vm3 = vcmask (!%p264_p2), 125952   ;;  %vm468_vm4 = vcmask (!%p264_p2), 122880  }
   0x8   : > { %583 = vset.pattern.permute.xlu0 (!%p264_p2), %v603_v3  ;;  %v321_v9 = vld [vmem:[%s699_s1] sm:$0xf] (!%p264_p2)  ;;  %s320_s22 = sld [smem:[#allocation2]] (!%p264_p2)  ;;  %vm472_vm5 = vcmask (!%p264_p2), 0  }
   0x9   : > { %439 = vperm.xlu0 (!%p264_p2), %583, %v436_v2   ;;  %v400_v11 = vshrl.u32 (!%p264_p2), %v399_v10, 7 }
   0xb   : > { %v403_v12 = vsub.s32 (!%p264_p2), 0, %v400_v11 }
   0xe   : > { %s709_s27 = smov (!%p308_p3, %s548_s27), 1  ;;  %s711_s28 = smov (!%p303_p4, %s553_s28), 3  ;;  %v425_v39 = vstv %s320_s22 }
   0xf   : > { %s316_s9 = scalar_lea.vmem %s703_s5, %s709_s27  ;;  %s554_s10 = sshll.u32 %s711_s28, 3 }
  0x10   : > { %v396_v4 = vld [vmem:[%s316_s9] sm:$0x1]  ;;  %s306_s13 = scalar_lea.vmem %s698_s0, %s554_s10  ;;  %s310_s18 = scalar_lea.vmem %s701_s3, %s709_s27 }
  0x11   : > { %vm464_vm1 = vcmp.ge.s32.totalorder %v396_v4, 0  ;;  %v322_v5 = vld [vmem:[%s306_s13] sm:$0xff]  ;;  %v323_v6 = vld [vmem:[%s306_s13 + $0x8] sm:$0xff]  ;;  %v404_v13 = vrot.slane %v396_v4, %v403_v12  ;;  %s313_s21 = scalar_lea.vmem %s702_s4, %s709_s27  ;;  %s448_s23 = sand.u32 2147483647, %s320_s22 }
  0x12   : > { %v667_v7 = vsel %vm464_vm1, 1.0, %v602_v1  ;;  %v569_v8 = vpack.c.bf16 %v323_v6, %v322_v5  ;;  %v394_v26 = vld [vmem:[%s310_s18] sm:$0x1]  ;;  %v449_v48 = vstv %s448_s23  ;;  %s319_s28 = scalar_lea.vmem %s705_s7, %s709_s27 }
  0x13   : > { %vm672_vm2 = vcmp.eq.s32.totalorder %v400_v11, %v404_v13  ;;  %v395_v27 = vld [vmem:[%s313_s21] sm:$0x1]  ;;  %v397_v29 = vmax.f32 %v394_v26, 1e-18 }
  0x14   : > { %570 = vmatpush3.bf16.xpose.msra.mxu0 %v569_v8 }
  0x15   : > { %584 = vrsqrt.f32 %v397_v29 }
  0x1b   : > { %566 = vmatmul.mubr.f32.vlgmr.msra.gmra.mrb[0].mxu0 %v321_v9 }
  0x1f   : > { %v585_v36 = vpop.eup %584 }
  0x20   : > { %v433_v38 = vrot.slane %v585_v36, %v403_v12 }
  0x88   : > { %v440_v44 = vpop.permute.xlu0 %439 }
  0xee   : > { %v390_v15 = vpop.f32.mrb[0].mxu0 }
  0xef   : > { %v406_v16 = vsel %vm672_vm2, %v390_v15, 0.0  ;;  %v567_v17 = vpop.f32.mrb[1].mxu0  ;;  %v435_v42 = vmul.f32 %v433_v38, %v390_v15 }
  0xf0   : > { %v408_v18 = vsel %vm407_vm3, %v406_v16, 0.0 }
  0xf1   : > { %v409_v19 = vrot.slane %v408_v18, 4  ;;  %v442_v46 = vmul.f32 %v440_v44, %v435_v42 }
  0xf3   : > { %v410_v20 = vadd.f32 %v409_v19, %v408_v18 }
  0xf5   : > { %v411_v21 = vrot.slane %v410_v20, 2 }
  0xf7   : > { %v412_v22 = vadd.f32 %v411_v21, %v410_v20 }
  0xf9   : > { %v413_v23 = vrot.slane %v412_v22, 1 }
  0xfb   : > { %v414_v24 = vadd.f32 %v413_v23, %v412_v22 }
  0xfd   : > { %v415_v25 = vmul.f32 8.0, %v414_v24 }
  0xff   : > { %v418_v28 = vmul.f32 2.0, %v415_v25  ;;  %v416_v35 = vsub.f32 %v415_v25, %v394_v26 }
 0x101   : > { %v419_v30 = vsub.f32 %v395_v27, %v418_v28  ;;  %v417_v37 = vmul.f32 0.14285715, %v416_v35 }
 0x103   : > { %v420_v31 = vadd.f32 %v419_v30, %v394_v26  ;;  %v426_v41 = vmul.f32 %v425_v39, %v417_v37 }
 0x105   : > { %v421_v32 = vmax.f32 %v420_v31, 0.0 }
 0x107   : > { %v422_v33 = vmul.f32 0.020408163, %v421_v32 }
 0x109   : > { %v423_v34 = vmax.f32 %v422_v33, 1e-18 }
 0x10b   : > { %586 = vrsqrt.f32 %v423_v34 }
 0x115   : > { %v587_v40 = vpop.eup %586 }
 0x116   : > { %v427_v43 = vmul.f32 %v587_v40, %v585_v36 }
 0x118   : > { %v428_v45 = vmul.f32 %v427_v43, %v426_v41 }
 0x11a   : > { %v446_v47 = vrot.slane %v428_v45, %v403_v12 }
 0x11c   : > { %v447_v49 = vsel %vm672_vm2, %v446_v47, %v442_v46 }
 0x11d   : > { %v450_v50 = vsub.f32 %v447_v49, %v449_v48 }
 0x11f   : > { %v451_v51 = vmul.f32 1.442695, %v450_v50 }
 0x121   : > { %588 = vpow2.f32 %v451_v51 }
 0x12b   : > { %v589_v52 = vpop.eup %588 }
 0x12c   : > { %v453_v53 = vsel %vm407_vm3, %v589_v52, 0.0 }
 0x12d   : > { %v454_v54 = vrot.slane %v453_v53, 4 }
 0x12f   : > { %v455_v55 = vadd.f32 %v454_v54, %v453_v53 }
 0x131   : > { %v456_v56 = vrot.slane %v455_v55, 2 }
 0x133   : > { %v457_v57 = vadd.f32 %v456_v56, %v455_v55 }
 0x135   : > { %v458_v58 = vrot.slane %v457_v57, 1 }
 0x137   : > { %v459_v59 = vadd.f32 %v458_v58, %v457_v57 }
 0x139   : > { %590 = vlog2.f32 %v459_v59 }
 0x143   : > { %v591_v60 = vpop.eup %590 }
 0x144   : > { %v461_v61 = vmul.f32 0.6931472, %v591_v60 }
 0x146   : > { %v462_v62 = vadd.f32 %v461_v61, %v449_v48 }
 0x148   : > { %v463_v63 = vsub.f32 %v462_v62, %v428_v45 }
 0x14a   : > { %v467_v0 = vmul.f32 %v667_v7, %v463_v63 }
 0x14c   : > { %v469_v1 = vsel %vm468_vm4, %v467_v0, 0.0 }
 0x14d   : > { %470 = vadd.xlane.f32.xlu0 %v469_v1 }
 0x1da   : > { %v471_v2 = vpop.xlane.xlu0 %470 }
 0x1db   : > { %473 = vst.msk [vmem:[%s319_s28] sm:$0x1] %vm472_vm5, %v471_v2 }
 0x1dc PF: > { %s18_s26 = sadd.s32 1, %s598_s26  }
 0x1dd   : > { %p15_p5 = scmp.ge.s32.totalorder %s18_s26, 4  }
 0x1df   :  { %17 = sbr.rel (!%p15_p5) target bundleno = 2 (0x2), region = 87 }

</bundles_post_ra>
